<compile_context>
chip_gen: v6e
topology: v6e:2x2x1
jax: 0.10.0
libtpu: 0.0.40
codegen_flags: <defaults>
</compile_context>

<pallas_src>
import functools
import numpy as np

import jax
import jax.numpy as jnp
from jax.experimental import pallas as pl
from jax.experimental.pallas import tpu as pltpu

_BN_EPS = 1e-5
_TM_MAX = 256                      # multiple of 128; fits v7x 64 MiB VMEM budget
_VMEM_LIMIT = 48 * 1024 * 1024     # leave headroom below v7x physical 64 MiB


# --------------------------------------------------------------------------
# Pallas kernel 1: fused (bf16 @ bf16 -> f32) * bn_scale + bn_shift [+res] [+relu]
# --------------------------------------------------------------------------
def _mm_bn_kernel(x_ref, w_ref, scale_ref, shift_ref, o_ref, *, relu):
    y = jnp.dot(x_ref[...], w_ref[...], preferred_element_type=jnp.float32)
    y = y * scale_ref[...] + shift_ref[...]
    if relu:
        y = jnp.maximum(y, 0.0)
    o_ref[...] = y


def _mm_bn_res_kernel(x_ref, w_ref, scale_ref, shift_ref, res_ref, o_ref, *, relu):
    y = jnp.dot(x_ref[...], w_ref[...], preferred_element_type=jnp.float32)
    y = y * scale_ref[...] + shift_ref[...] + res_ref[...]
    if relu:
        y = jnp.maximum(y, 0.0)
    o_ref[...] = y


@functools.lru_cache(maxsize=None)
def _make_mm_call(M, K, N, tm, relu, has_res):
    in_specs = [
        pl.BlockSpec((tm, K), lambda i: (i, 0)),   # bf16 im2col patch tile
        pl.BlockSpec((K, N), lambda i: (0, 0)),    # bf16 conv weight (grid-invariant)
        pl.BlockSpec((1, N), lambda i: (0, 0)),    # folded BN scale (f32)
        pl.BlockSpec((1, N), lambda i: (0, 0)),    # folded BN shift (f32)
    ]
    # TODO(synk): single-buffer the grid-invariant weight/scale/shift blocks
    # (pipeline_mode=pl.Buffered(1)) and/or tile K with a VMEM accumulator for
    # the K=4608 layers if VMEM gets tight at larger tm.
    if has_res:
        in_specs.append(pl.BlockSpec((tm, N), lambda i: (i, 0)))   # f32 residual tile
        kernel = functools.partial(_mm_bn_res_kernel, relu=relu)
    else:
        kernel = functools.partial(_mm_bn_kernel, relu=relu)
    return pl.pallas_call(
        kernel,
        out_shape=jax.ShapeDtypeStruct((M, N), jnp.float32),
        grid=(pl.cdiv(M, tm),),
        in_specs=in_specs,
        out_specs=pl.BlockSpec((tm, N), lambda i: (i, 0)),
        compiler_params=pltpu.CompilerParams(
            dimension_semantics=("parallel",),       # no reduction axis in this grid
            vmem_limit_bytes=_VMEM_LIMIT),
    )


def fused_matmul_bn_act(x_bf16, w_bf16, scale, shift, res, relu):
    M, K = x_bf16.shape
    N = w_bf16.shape[1]
    tm = min(_TM_MAX, ((M + 7) // 8) * 8)        # >=8, multiple of 8, capped at 256
    call = _make_mm_call(M, K, N, tm, bool(relu), res is not None)
    if res is None:
        return call(x_bf16, w_bf16, scale, shift)
    return call(x_bf16, w_bf16, scale, shift, res)


# --------------------------------------------------------------------------
# Conv / ResNet18 backbone (NHWC), conv = bf16 im2col + Pallas fused matmul
# --------------------------------------------------------------------------
def _im2col(x, kh, kw, stride, pad):
    # x: (N, H, W, C) -> patches (N*Ho*Wo, kh*kw*C); built in x.dtype (bf16)
    # TODO(synk): build patches inside the kernel (tile + halo DMA) to cut the
    # remaining kh*kw HBM inflation for the 3x3 convs.
    if pad:
        x = jnp.pad(x, ((0, 0), (pad, pad), (pad, pad), (0, 0)))
    N, H, W, C = x.shape
    Ho = (H - kh) // stride + 1
    Wo = (W - kw) // stride + 1
    cols = []
    for i in range(kh):
        for j in range(kw):
            cols.append(x[:, i:i + Ho * stride:stride, j:j + Wo * stride:stride, :])
    patches = jnp.stack(cols, axis=3)                       # (N, Ho, Wo, kh*kw, C)
    return patches.reshape(N * Ho * Wo, kh * kw * C), (N, Ho, Wo)


def conv_bn_act(x, p, stride, pad, relu, residual=None):
    kh, kw, cin, cout = p['w'].shape
    patches, (N, Ho, Wo) = _im2col(x.astype(jnp.bfloat16), kh, kw, stride, pad)
    wmat = p['w'].reshape(kh * kw * cin, cout)               # already bf16
    res = None if residual is None else residual.reshape(N * Ho * Wo, cout)
    y = fused_matmul_bn_act(patches, wmat, p['scale'], p['shift'], res, relu)
    return y.reshape(N, Ho, Wo, cout)


def maxpool_3x3_s2(x):
    # glue op (nn.MaxPool2d(3, stride=2, padding=1)); input is post-ReLU so -inf pad is safe
    return jax.lax.reduce_window(x, -jnp.inf, jax.lax.max,
                                 (1, 3, 3, 1), (1, 2, 2, 1),
                                 [(0, 0), (1, 1), (1, 1), (0, 0)])


def basic_block(x, p, stride):
    identity = x
    out = conv_bn_act(x, p['conv1'], stride=stride, pad=1, relu=True)
    if 'down' in p:
        identity = conv_bn_act(x, p['down'], stride=stride, pad=0, relu=False)
    out = conv_bn_act(out, p['conv2'], stride=1, pad=1, relu=True, residual=identity)
    return out


def resnet18_forward(x_nhwc, params):
    # TODO(synk): conv1/layer1 outputs are 64-wide (<128 lanes) -> masked partial
    # stores; packing two M tiles per lane group would make those stores lane-dense.
    x = conv_bn_act(x_nhwc, params['conv1'], stride=2, pad=3, relu=True)
    x = maxpool_3x3_s2(x)
    for name, stride in (('layer1', 1), ('layer2', 2), ('layer3', 2), ('layer4', 2)):
        x = basic_block(x, params[name][0], stride)
        x = basic_block(x, params[name][1], 1)
    return x  # (N, H', W', 512) pre-pool feature map


# --------------------------------------------------------------------------
# Pallas kernel 2: fusion head (avg-pool reduction + linears + ACMo gating)
# --------------------------------------------------------------------------
def _head_kernel(a_ref, v_ref, m_ref, wa_ref, ba_ref, wv_ref, bv_ref,
                 ws_ref, bs_ref,
                 pa_ref, pv_ref, oa_ref, ov_ref, oc_ref,
                 *, depd_modality, scale):
    a_pool = jnp.mean(a_ref[...], axis=1)               # adaptive_avg_pool2d(a, 1)
    v_pool = jnp.mean(v_ref[...], axis=1)               # adaptive_avg_pool3d(v, 1)
    pa_ref[...] = a_pool                                 # _a
    pv_ref[...] = v_pool                                 # _v
    a = jnp.dot(a_pool, wa_ref[...], preferred_element_type=jnp.float32) + ba_ref[...]
    v = jnp.dot(v_pool, wv_ref[...], preferred_element_type=jnp.float32) + bv_ref[...]
    if depd_modality == 'audio':
        a = a * m_ref[...] * scale
    elif depd_modality == 'visual':
        v = v * m_ref[...] * scale
    co = a + v
    ws = ws_ref[...]
    bs = bs_ref[...]
    oa_ref[...] = jnp.dot(a, ws, preferred_element_type=jnp.float32) + bs
    ov_ref[...] = jnp.dot(v, ws, preferred_element_type=jnp.float32) + bs
    oc_ref[...] = jnp.dot(co, ws, preferred_element_type=jnp.float32) + bs


# --------------------------------------------------------------------------
# Parameter init (deterministic, synthetic)
# --------------------------------------------------------------------------
def _conv_bn_params(key, kh, kw, cin, cout):
    std = float(np.sqrt(2.0 / (kh * kw * cin)))          # Kaiming-normal (ResNet default)
    w = (jax.random.normal(key, (kh, kw, cin, cout), jnp.float32) * std
         ).astype(jnp.bfloat16)                           # bf16 MXU operand
    # eval-mode BN folded: gamma=1, beta=0, running_mean=0, running_var=1 (kept f32)
    scale = jnp.full((1, cout), 1.0 / np.sqrt(1.0 + _BN_EPS), jnp.float32)
    shift = jnp.zeros((1, cout), jnp.float32)
    return {'w': w, 'scale': scale, 'shift': shift}


def init_resnet18(key, in_ch):
    keys = iter(jax.random.split(key, 32))
    params = {'conv1': _conv_bn_params(next(keys), 7, 7, in_ch, 64)}
    in_c = 64
    for li, c in enumerate((64, 128, 256, 512)):
        blocks = []
        for b in range(2):
            stride = 2 if (li > 0 and b == 0) else 1
            blk = {'conv1': _conv_bn_params(next(keys), 3, 3, in_c, c),
                   'conv2': _conv_bn_params(next(keys), 3, 3, c, c)}
            if stride != 1 or in_c != c:
                blk['down'] = _conv_bn_params(next(keys), 1, 1, in_c, c)
            blocks.append(blk)
            in_c = c
        params['layer%d' % (li + 1)] = blocks
    return params


def init_linear(key, fan_in, fan_out):
    kw_, kb_ = jax.random.split(key)
    bound = 1.0 / np.sqrt(fan_in)
    w = jax.random.uniform(kw_, (fan_in, fan_out), jnp.float32, -bound, bound)
    b = jax.random.uniform(kb_, (1, fan_out), jnp.float32, -bound, bound)
    return w, b


def init_avclassifier_acmo(key, U=100, n_classes=6):
    k_a, k_v, k_la, k_lv, k_ls = jax.random.split(key, 5)
    return {
        'audio_net': init_resnet18(k_a, in_ch=1),
        'visual_net': init_resnet18(k_v, in_ch=3),
        'linear_a': init_linear(k_la, 512, U),
        'linear_v': init_linear(k_lv, 512, U),
        'linear_star': init_linear(k_ls, U, n_classes),
    }
# TODO(synk): fusion_module (Sum/Concat/FiLM/Gated) is built in __init__ but never
# used in this forward(), so it is intentionally not instantiated here.


# --------------------------------------------------------------------------
# Full forward
# --------------------------------------------------------------------------
def avclassifier_acmo_forward(params, audio, visual, masks, depd_modality, pt):
    B = audio.shape[0]
    # backbones (NCHW -> NHWC)
    a_map = resnet18_forward(jnp.transpose(audio, (0, 2, 3, 1)), params['audio_net'])
    Bv, C3, T, Hv, Wv = visual.shape
    v_frames = jnp.transpose(visual, (0, 2, 3, 4, 1)).reshape(Bv * T, Hv, Wv, C3)
    v_map = resnet18_forward(v_frames, params['visual_net'])
    a_feat = a_map.reshape(B, -1, 512)          # (B, Ha'*Wa', 512), f32
    v_feat = v_map.reshape(B, -1, 512)          # (B, T*Hv'*Wv', 512), f32

    # Python-level branch on pt, exactly like the torch code
    if abs(pt - 1.0) > 0.1:
        scale = 1.0 / (1.0 - pt)
    else:
        scale = 10.0

    wa, ba = params['linear_a']
    wv, bv = params['linear_v']
    ws, bs = params['linear_star']
    n_classes = ws.shape[1]

    kernel = functools.partial(_head_kernel,
                               depd_modality=depd_modality, scale=float(scale))
    out_shapes = (
        jax.ShapeDtypeStruct((B, 512), jnp.float32),        # _a
        jax.ShapeDtypeStruct((B, 512), jnp.float32),        # _v
        jax.ShapeDtypeStruct((B, n_classes), jnp.float32),  # out_a
        jax.ShapeDtypeStruct((B, n_classes), jnp.float32),  # out_v
        jax.ShapeDtypeStruct((B, n_classes), jnp.float32),  # out_co
    )
    # TODO(synk): for large batch*frames, tile this head over B (and feed the
    # pooled features in bf16) so v_feat residency stays within v7x's 64 MiB VMEM.
    return pl.pallas_call(
        kernel, out_shape=out_shapes,
        compiler_params=pltpu.CompilerParams(vmem_limit_bytes=_VMEM_LIMIT),
    )(a_feat, v_feat, masks, wa, ba, wv, bv, ws, bs)


if __name__ == "__main__":
    B, T, H, W = 2, 2, 16, 16
    U, n_classes = 100, 6            # args.U=100, dataset='CREMAD'

    key = jax.random.PRNGKey(0)
    k_param, k_aud, k_vis, k_msk = jax.random.split(key, 4)
    params = init_avclassifier_acmo(k_param, U=U, n_classes=n_classes)

    audio = jax.random.normal(k_aud, (B, 1, H, W), jnp.float32)       # spectrogram, NCHW
    visual = jax.random.normal(k_vis, (B, 3, T, H, W), jnp.float32)   # frames, NCTHW
    masks = (jax.random.uniform(k_msk, (B, U)) > 0.5).astype(jnp.float32)

    outs = avclassifier_acmo_forward(params, audio, visual, masks,
                                     depd_modality='audio', pt=0.5)
    for o in outs:
        jax.block_until_ready(o)
    _a, _v, out_a, out_v, out_co = outs
    assert _a.shape == (B, 512) and _v.shape == (B, 512)
    assert out_a.shape == (B, n_classes) and out_v.shape == (B, n_classes)
    assert out_co.shape == (B, n_classes)
    assert np.all(np.isfinite(np.asarray(_a))) and np.all(np.isfinite(np.asarray(_v)))
    assert np.all(np.isfinite(np.asarray(out_co)))
    print("KERNEL_OK")
</pallas_src>

<mosaic_0001>
module attributes {stable_mosaic.version = 11 : i64} {
  func.func @_mm_bn_kernel(%arg0: i32, %arg1: memref<128x49xbf16, #tpu.memory_space<vmem>>, %arg2: memref<49x64xbf16, #tpu.memory_space<vmem>>, %arg3: memref<1x64xf32, #tpu.memory_space<vmem>>, %arg4: memref<1x64xf32, #tpu.memory_space<vmem>>, %arg5: memref<128x64xf32, #tpu.memory_space<vmem>>) attributes {dimension_semantics = [#tpu.dimension_semantics<parallel>], iteration_bounds = array<i64: 1>, scalar_prefetch = 0 : i64, scratch_operands = 0 : i64, tpu.core_type = #tpu.core_type<tc>, window_params = [{transform_indices = @transform_0, window_bounds = array<i64: 128, 49>}, {pipeline_mode = #tpu.pipeline_mode<synchronous>, transform_indices = @transform_1, window_bounds = array<i64: 49, 64>}, {pipeline_mode = #tpu.pipeline_mode<synchronous>, transform_indices = @transform_2, window_bounds = array<i64: 1, 64>}, {pipeline_mode = #tpu.pipeline_mode<synchronous>, transform_indices = @transform_3, window_bounds = array<i64: 1, 64>}, {transform_indices = @transform_4, window_bounds = array<i64: 128, 64>}]} {
    %c0 = arith.constant 0 : index
    %c0_0 = arith.constant 0 : index
    %0 = vector.load %arg1[%c0, %c0_0] : memref<128x49xbf16, #tpu.memory_space<vmem>>, vector<128x49xbf16>
    %c0_1 = arith.constant 0 : index
    %c0_2 = arith.constant 0 : index
    %1 = vector.load %arg2[%c0_1, %c0_2] : memref<49x64xbf16, #tpu.memory_space<vmem>>, vector<49x64xbf16>
    %cst = arith.constant dense<0.000000e+00> : vector<128x64xf32>
    %2 = tpu.matmul %0, %1, %cst {dimension_numbers = #tpu.dot_dimension_numbers<[1], [0], [0], [1], [0, 0, 1, 1], [], []>} : vector<128x49xbf16>, vector<49x64xbf16>, vector<128x64xf32> -> vector<128x64xf32>
    %c0_3 = arith.constant 0 : index
    %c0_4 = arith.constant 0 : index
    %3 = vector.load %arg3[%c0_3, %c0_4] : memref<1x64xf32, #tpu.memory_space<vmem>>, vector<1x64xf32>
    %4 = vector.broadcast %3 : vector<1x64xf32> to vector<128x64xf32>
    %5 = arith.mulf %2, %4 : vector<128x64xf32>
    %c0_5 = arith.constant 0 : index
    %c0_6 = arith.constant 0 : index
    %6 = vector.load %arg4[%c0_5, %c0_6] : memref<1x64xf32, #tpu.memory_space<vmem>>, vector<1x64xf32>
    %7 = vector.broadcast %6 : vector<1x64xf32> to vector<128x64xf32>
    %8 = arith.addf %5, %7 : vector<128x64xf32>
    %cst_7 = arith.constant 0.000000e+00 : f32
    %9 = vector.broadcast %cst_7 : f32 to vector<128x64xf32>
    %10 = arith.maximumf %8, %9 : vector<128x64xf32>
    %c0_8 = arith.constant 0 : index
    %c0_9 = arith.constant 0 : index
    %11 = vector.load %arg5[%c0_8, %c0_9] : memref<128x64xf32, #tpu.memory_space<vmem>>, vector<128x64xf32>
    tpu.vector_store %arg5[%c0_8, %c0_9], %10 {strides = array<i32>} : memref<128x64xf32, #tpu.memory_space<vmem>>, vector<128x64xf32>,
    return
  }
  func.func @transform_0(%arg0: i32) -> (i32, i32) {
    %c0_i32 = arith.constant 0 : i32
    %c0_i32_0 = arith.constant 0 : i32
    return %arg0, %c0_i32 : i32, i32
  }
  func.func @transform_1(%arg0: i32) -> (i32, i32) {
    %c0_i32 = arith.constant 0 : i32
    %c0_i32_0 = arith.constant 0 : i32
    %c0_i32_1 = arith.constant 0 : i32
    return %c0_i32, %c0_i32_0 : i32, i32
  }
  func.func @transform_2(%arg0: i32) -> (i32, i32) {
    %c0_i32 = arith.constant 0 : i32
    %c0_i32_0 = arith.constant 0 : i32
    %c0_i32_1 = arith.constant 0 : i32
    return %c0_i32, %c0_i32_0 : i32, i32
  }
  func.func @transform_3(%arg0: i32) -> (i32, i32) {
    %c0_i32 = arith.constant 0 : i32
    %c0_i32_0 = arith.constant 0 : i32
    %c0_i32_1 = arith.constant 0 : i32
    return %c0_i32, %c0_i32_0 : i32, i32
  }
  func.func @transform_4(%arg0: i32) -> (i32, i32) {
    %c0_i32 = arith.constant 0 : i32
    %c0_i32_0 = arith.constant 0 : i32
    return %arg0, %c0_i32 : i32, i32
  }
}

</mosaic_0001>

<bundles_post_ra>
// kernel: tpu_custom_call.1
= control target key start
LH: loop header
LB: loop body
LE: loop exit
PB: predicated region body
PF: predicated region fallthrough
CT: control target
= control target key end

     0   :  { %vm127_vm0 = vcmask 1040384   ;;  %v392_v1 = vmov 0   ;;  %vm102_vm1 = vcmask 400384   ;;  %vm292_vm2 = vcmask 523264   ;;  %s568_s1 = inlined_call_operand.vmem [shape: bf16[49,64], index: 1, kind: input, shape index: {}]   ;;  %s569_s0 = inlined_call_operand.vmem [shape: bf16[128,49], index: 0, kind: input, shape index: {}]   ;;  %s570_s2 = inlined_call_operand.vmem [shape: f32[1,64], index: 2, kind: input, shape index: {}]   ;;  %s571_s3 = inlined_call_operand.vmem [shape: f32[1,64], index: 3, kind: input, shape index: {}]   ;;  %s572_s4 = inlined_call_operand.vmem [shape: f32[128,64], index: 4, kind: output, shape index: {}]  }
   0x1   :  { %v380_v0 = vld [vmem:[%s568_s1 + $0x18] ss:$0 sps:$4 sm:$0x11]   ;;  %v129_v2 = vsel %vm127_vm0, 65535, %v392_v1  ;;  %v381_v4 = vld [vmem:[%s568_s1 + $0x10] sm:$0xff]   ;;  %v384_v5 = vld [vmem:[%s569_s0] sm:$0xff]  }
   0x2   :  { %v131_v3 = vand.u32 %v380_v0, %v129_v2  ;;  %v385_v6 = vld [vmem:[%s569_s0 + $0x20] sm:$0xff]   ;;  %v382_v7 = vld [vmem:[%s568_s1 + $0x8] sm:$0xff]   ;;  %355 = vmatprep.mubr.msk.bf16.mxu0 %vm102_vm1, %v384_v5  ;;  %v388_v11 = vld [vmem:[%s569_s0 + $0x10] sm:$0xff]  }
   0x3   :  { %363 = vmatprep.mubr.msk.bf16.mxu1 %vm102_vm1, %v385_v6  ;;  %v383_v8 = vld [vmem:[%s568_s1] sm:$0xff]   ;;  %v386_v9 = vld [vmem:[%s569_s0 + $0x8] sm:$0xff]   ;;  %v389_v12 = vld [vmem:[%s569_s0 + $0x30] sm:$0xff]  }
   0x4   :  { %347 = vmatprep.subr.bf16.mxu0 %v131_v3  ;;  %371 = vmatprep.subr.bf16.mxu1 %v131_v3  ;;  %v387_v10 = vld [vmem:[%s569_s0 + $0x28] sm:$0xff]   ;;  %v390_v13 = vld [vmem:[%s569_s0 + $0x18] sm:$0xff]   ;;  %v465_v15 = vld [vmem:[%s570_s2] ss:$0 sm:$0xff] }
   0x5   :  { %348 = vmatpush3.bf16.msra.mxu0 %v131_v3  ;;  %375 = vmatpush3.bf16.msra.mxu1 %v131_v3  ;;  %v391_v14 = vld [vmem:[%s569_s0 + $0x38] sm:$0xff]   ;;  %v470_v17 = vld [vmem:[%s571_s3] ss:$0 sm:$0xff] }
   0x6   :  { %349 = vmatprep.subr.bf16.mxu0 %v381_v4  ;;  %372 = vmatprep.subr.bf16.mxu1 %v381_v4 }
   0x9   :  { %350 = vmatpush3.bf16.msra.mxu0 %v381_v4  ;;  %376 = vmatpush3.bf16.msra.mxu1 %v381_v4 }
   0xa   :  { %351 = vmatprep.subr.bf16.mxu0 %v382_v7  ;;  %373 = vmatprep.subr.bf16.mxu1 %v382_v7 }
   0xd   :  { %352 = vmatpush3.bf16.msra.mxu0 %v382_v7  ;;  %377 = vmatpush3.bf16.msra.mxu1 %v382_v7 }
   0xe   :  { %353 = vmatprep.subr.bf16.mxu0 %v383_v8  ;;  %374 = vmatprep.subr.bf16.mxu1 %v383_v8 }
  0x11   :  { %354 = vmatpush3.bf16.msra.mxu0 %v383_v8  ;;  %378 = vmatpush3.bf16.msra.mxu1 %v383_v8 }
  0x14   :  { %356 = vmatmul.mubr.msk.bf16.vlgmr.msra.gmra.mxu0 %vm102_vm1, %v386_v9  ;;  %364 = vmatmul.mubr.msk.bf16.vlgmr.msra.gmra.mxu1 %vm102_vm1, %v387_v10 }
  0x15   :  { %359 = vmatprep.mubr.msk.bf16.mxu0 %vm102_vm1, %v388_v11  ;;  %367 = vmatprep.mubr.msk.bf16.mxu1 %vm102_vm1, %v389_v12 }
  0x1c   :  { %360 = vmatmul.mubr.msk.bf16.gmra.mxu0 %vm102_vm1, %v390_v13  ;;  %368 = vmatmul.mubr.msk.bf16.gmra.mxu1 %vm102_vm1, %v391_v14 }
  0xd4   :  { %v357_v16 = vpop.f32.mrf.mxu0  ;;  %v365_v18 = vpop.f32.mrf.mxu1 }
  0xd5   :  { %v239_v19 = vmul.f32 %v357_v16, %v465_v15  ;;  %v247_v20 = vmul.f32 %v365_v18, %v465_v15 }
  0xd6   :  { %v167_v21 = vpop.f32.mrf.mxu0  ;;  %v199_v22 = vpop.f32.mrf.mxu1 }
  0xd7   :  { %v262_v23 = vadd.f32 %v470_v17, %v239_v19  ;;  %v270_v24 = vadd.f32 %v470_v17, %v247_v20  ;;  %v237_v25 = vmul.f32 %v465_v15, %v167_v21  ;;  %v245_v26 = vmul.f32 %v465_v15, %v199_v22 }
  0xd8   :  { %v358_v27 = vpop.f32.mrf.mxu0  ;;  %v366_v28 = vpop.f32.mrf.mxu1 }
  0xd9   :  { %v278_v29 = vmax.f32 %v262_v23, 0.0  ;;  %v286_v30 = vmax.f32 %v270_v24, 0.0  ;;  %v260_v31 = vadd.f32 %v470_v17, %v237_v25  ;;  %v268_v32 = vadd.f32 %v470_v17, %v245_v26 }
  0xda   :  { %v240_v33 = vmul.f32 %v358_v27, %v465_v15  ;;  %v248_v34 = vmul.f32 %v366_v28, %v465_v15  ;;  %v170_v35 = vpop.f32.mrf.mxu0  ;;  %v202_v36 = vpop.f32.mrf.mxu1 }
  0xdb   :  { %295 = vst.msk [vmem:[%s572_s4 + $0x10] sm:$0xff] %vm292_vm2, %v278_v29  ;;  %303 = vst.msk [vmem:[%s572_s4 + $0x50] sm:$0xff] %vm292_vm2, %v286_v30  ;;  %v276_v37 = vmax.f32 %v260_v31, 0.0  ;;  %v284_v38 = vmax.f32 %v268_v32, 0.0  ;;  %v238_v39 = vmul.f32 %v465_v15, %v170_v35  ;;  %v246_v40 = vmul.f32 %v465_v15, %v202_v36 }
  0xdc   :  { %v263_v41 = vadd.f32 %v470_v17, %v240_v33  ;;  %v271_v42 = vadd.f32 %v470_v17, %v248_v34  ;;  %v361_v43 = vpop.f32.mrf.mxu0  ;;  %v369_v44 = vpop.f32.mrf.mxu1 }
  0xdd   :  { %293 = vst.msk [vmem:[%s572_s4] sm:$0xff] %vm292_vm2, %v276_v37  ;;  %301 = vst.msk [vmem:[%s572_s4 + $0x40] sm:$0xff] %vm292_vm2, %v284_v38  ;;  %v261_v45 = vadd.f32 %v470_v17, %v238_v39  ;;  %v269_v46 = vadd.f32 %v470_v17, %v246_v40  ;;  %v243_v47 = vmul.f32 %v361_v43, %v465_v15 }
  0xde   :  { %v251_v48 = vmul.f32 %v369_v44, %v465_v15  ;;  %v279_v49 = vmax.f32 %v263_v41, 0.0  ;;  %v287_v50 = vmax.f32 %v271_v42, 0.0  ;;  %v183_v51 = vpop.f32.mrf.mxu0  ;;  %v215_v52 = vpop.f32.mrf.mxu1 }
  0xdf   :  { %v277_v53 = vmax.f32 %v261_v45, 0.0  ;;  %v285_v54 = vmax.f32 %v269_v46, 0.0  ;;  %v266_v55 = vadd.f32 %v470_v17, %v243_v47  ;;  %v241_v57 = vmul.f32 %v465_v15, %v183_v51 }
  0xe0   :  { %v274_v56 = vadd.f32 %v470_v17, %v251_v48  ;;  %296 = vst.msk [vmem:[%s572_s4 + $0x18] sm:$0xff] %vm292_vm2, %v279_v49  ;;  %304 = vst.msk [vmem:[%s572_s4 + $0x58] sm:$0xff] %vm292_vm2, %v287_v50  ;;  %v249_v58 = vmul.f32 %v465_v15, %v215_v52  ;;  %v362_v59 = vpop.f32.mrf.mxu0  ;;  %v370_v60 = vpop.f32.mrf.mxu1 }
  0xe1   :  { %294 = vst.msk [vmem:[%s572_s4 + $0x8] sm:$0xff] %vm292_vm2, %v277_v53  ;;  %302 = vst.msk [vmem:[%s572_s4 + $0x48] sm:$0xff] %vm292_vm2, %v285_v54  ;;  %v282_v61 = vmax.f32 %v266_v55, 0.0  ;;  %v244_v63 = vmul.f32 %v362_v59, %v465_v15  ;;  %v252_v0 = vmul.f32 %v370_v60, %v465_v15  ;;  %v264_v1 = vadd.f32 %v470_v17, %v241_v57 }
  0xe2   :  { %v290_v62 = vmax.f32 %v274_v56, 0.0  ;;  %v272_v2 = vadd.f32 %v470_v17, %v249_v58  ;;  %v186_v3 = vpop.f32.mrf.mxu0  ;;  %v218_v4 = vpop.f32.mrf.mxu1 }
  0xe3   :  { %299 = vst.msk [vmem:[%s572_s4 + $0x30] sm:$0xff] %vm292_vm2, %v282_v61  ;;  %v267_v5 = vadd.f32 %v470_v17, %v244_v63  ;;  %v275_v6 = vadd.f32 %v470_v17, %v252_v0  ;;  %v242_v7 = vmul.f32 %v465_v15, %v186_v3  ;;  %v250_v8 = vmul.f32 %v465_v15, %v218_v4 }
  0xe4   :  { %307 = vst.msk [vmem:[%s572_s4 + $0x70] sm:$0xff] %vm292_vm2, %v290_v62  ;;  %v280_v9 = vmax.f32 %v264_v1, 0.0  ;;  %v288_v10 = vmax.f32 %v272_v2, 0.0 }
  0xe5   :  { %v283_v11 = vmax.f32 %v267_v5, 0.0  ;;  %v291_v12 = vmax.f32 %v275_v6, 0.0  ;;  %v265_v13 = vadd.f32 %v470_v17, %v242_v7  ;;  %v273_v14 = vadd.f32 %v470_v17, %v250_v8 }
  0xe6   :  { %297 = vst.msk [vmem:[%s572_s4 + $0x20] sm:$0xff] %vm292_vm2, %v280_v9  ;;  %305 = vst.msk [vmem:[%s572_s4 + $0x60] sm:$0xff] %vm292_vm2, %v288_v10 }
  0xe7   :  { %300 = vst.msk [vmem:[%s572_s4 + $0x38] sm:$0xff] %vm292_vm2, %v283_v11  ;;  %308 = vst.msk [vmem:[%s572_s4 + $0x78] sm:$0xff] %vm292_vm2, %v291_v12  ;;  %v281_v15 = vmax.f32 %v265_v13, 0.0  ;;  %v289_v16 = vmax.f32 %v273_v14, 0.0 }
  0xe9   :  { %298 = vst.msk [vmem:[%s572_s4 + $0x28] sm:$0xff] %vm292_vm2, %v281_v15  ;;  %306 = vst.msk [vmem:[%s572_s4 + $0x68] sm:$0xff] %vm292_vm2, %v289_v16 }

</bundles_post_ra>
